<compile_context>
chip_gen: v7x
topology: tpu7x:2x2x1
jax: 0.10.0
libtpu: 0.0.40
codegen_flags: <defaults>
</compile_context>

<pallas_src>
import jax
import jax.numpy as jnp
from jax.experimental import pallas as pl
from jax.experimental.pallas import tpu as pltpu


def gate_layer_kernel(x_ref, wl_ref, wg_ref, bl_ref, bg_ref, o_ref,
                      lin_acc, gate_acc):
    # Per-grid-step views:
    #   x_ref  : (tm, tk)       wl_ref / wg_ref : (tk, tn)  (already transposed)
    #   bl_ref / bg_ref : (1, tn)        o_ref : (tm, tn)
    #   lin_acc / gate_acc : (tm, tn) f32 VMEM scratch accumulators
    k = pl.program_id(2)

    @pl.when(k == 0)
    def _():
        lin_acc[...] = jnp.zeros_like(lin_acc)
        gate_acc[...] = jnp.zeros_like(gate_acc)

    x = x_ref[...]
    lin_acc[...] += jnp.dot(x, wl_ref[...], preferred_element_type=jnp.float32)
    gate_acc[...] += jnp.dot(x, wg_ref[...], preferred_element_type=jnp.float32)

    @pl.when(k == pl.num_programs(2) - 1)
    def _():
        lin = lin_acc[...] + bl_ref[...]        # broadcast (1, tn) over rows
        gate = gate_acc[...] + bg_ref[...]
        o_ref[...] = (lin * jax.nn.sigmoid(gate)).astype(o_ref.dtype)


def _pick_tile(dim, cap, align):
    """Largest tile <= cap that divides dim and is a multiple of `align`,
    falling back to the full dim (full-extent blocks are always legal)."""
    if dim <= cap:
        return dim
    start = cap - (cap % align)
    for t in range(start, 0, -align):
        if dim % t == 0:
            return t
    return dim


def gate_layer(x, w_linear, b_linear, w_gate, b_gate):
    orig_shape = x.shape
    d_in = orig_shape[-1]
    d_out = w_linear.shape[0]
    m = 1
    for s in orig_shape[:-1]:
        m *= s

    x2 = x.reshape(m, d_in)
    # One-time, outside-the-kernel transpose to canonical (K, N) matmul layout.
    wl_t = jnp.transpose(w_linear)   # (d_in, d_out)
    wg_t = jnp.transpose(w_gate)     # (d_in, d_out)
    bl = b_linear.reshape(1, d_out)
    bg = b_gate.reshape(1, d_out)

    tm = _pick_tile(m, 256, 8)        # second-minor: multiple of 8 (or full)
    tn = _pick_tile(d_out, 256, 128)  # lane dim of output: multiple of 128 (or full)
    tk = _pick_tile(d_in, 512, 128)   # contraction dim: multiple of 128 (or full)

    grid = (m // tm, d_out // tn, d_in // tk)

    out = pl.pallas_call(
        gate_layer_kernel,
        out_shape=jax.ShapeDtypeStruct((m, d_out), x.dtype),
        grid_spec=pltpu.PrefetchScalarGridSpec(
            num_scalar_prefetch=0,
            grid=grid,
            in_specs=[
                pl.BlockSpec((tm, tk), lambda i, j, k: (i, k)),   # x
                pl.BlockSpec((tk, tn), lambda i, j, k: (k, j)),   # W_linear^T
                pl.BlockSpec((tk, tn), lambda i, j, k: (k, j)),   # W_gate^T
                pl.BlockSpec((1, tn), lambda i, j, k: (0, j)),    # b_linear
                pl.BlockSpec((1, tn), lambda i, j, k: (0, j)),    # b_gate
            ],
            out_specs=pl.BlockSpec((tm, tn), lambda i, j, k: (i, j)),
            scratch_shapes=[
                pltpu.VMEM((tm, tn), jnp.float32),
                pltpu.VMEM((tm, tn), jnp.float32),
            ],
        ),
        compiler_params=pltpu.CompilerParams(
            dimension_semantics=("parallel", "parallel", "arbitrary"),
        ),
    )(x2, wl_t, wg_t, bl, bg)

    return out.reshape(*orig_shape[:-1], d_out)


def gate_layer_reference(x, w_linear, b_linear, w_gate, b_gate):
    lin = x @ w_linear.T + b_linear
    gate = x @ w_gate.T + b_gate
    return lin * jax.nn.sigmoid(gate)


if __name__ == "__main__":
    B, S, D_IN, D_OUT = 2, 8, 32, 32

    key = jax.random.PRNGKey(0)
    k_x, k_wl, k_bl, k_wg, k_bg = jax.random.split(key, 5)

    x = jax.random.normal(k_x, (B, S, D_IN), dtype=jnp.float32)

    # nn.Linear default init: U(-1/sqrt(d_in), 1/sqrt(d_in)) for weight & bias.
    bound = 1.0 / (D_IN ** 0.5)
    w_linear = jax.random.uniform(k_wl, (D_OUT, D_IN), minval=-bound, maxval=bound,
                                  dtype=jnp.float32)
    b_linear = jax.random.uniform(k_bl, (D_OUT,), minval=-bound, maxval=bound,
                                  dtype=jnp.float32)
    w_gate = jax.random.uniform(k_wg, (D_OUT, D_IN), minval=-bound, maxval=bound,
                                dtype=jnp.float32)
    b_gate = jax.random.uniform(k_bg, (D_OUT,), minval=-bound, maxval=bound,
                                dtype=jnp.float32)

    out = gate_layer(x, w_linear, b_linear, w_gate, b_gate)
    out = jax.block_until_ready(out)

    ref = gate_layer_reference(x, w_linear, b_linear, w_gate, b_gate)
    assert out.shape == (B, S, D_OUT)
    assert jnp.allclose(out, ref, rtol=1e-5, atol=1e-5), "mismatch vs reference"

    print("KERNEL_OK")
</pallas_src>

<mosaic_0001>
module attributes {stable_mosaic.version = 11 : i64} {
  func.func @gate_layer_kernel(%arg0: i32, %arg1: i32, %arg2: i32, %arg3: memref<16x32xf32, #tpu.memory_space<vmem>>, %arg4: memref<32x32xf32, #tpu.memory_space<vmem>>, %arg5: memref<32x32xf32, #tpu.memory_space<vmem>>, %arg6: memref<1x32xf32, #tpu.memory_space<vmem>>, %arg7: memref<1x32xf32, #tpu.memory_space<vmem>>, %arg8: memref<16x32xf32, #tpu.memory_space<vmem>>, %arg9: memref<16x32xf32, #tpu.memory_space<vmem>>, %arg10: memref<16x32xf32, #tpu.memory_space<vmem>>) attributes {dimension_semantics = [#tpu.dimension_semantics<parallel>, #tpu.dimension_semantics<parallel>, #tpu.dimension_semantics<arbitrary>], iteration_bounds = array<i64: 1, 1, 1>, scalar_prefetch = 0 : i64, scratch_operands = 2 : i64, tpu.core_type = #tpu.core_type<tc>, window_params = [{transform_indices = @transform_0, window_bounds = array<i64: 16, 32>}, {transform_indices = @transform_1, window_bounds = array<i64: 32, 32>}, {transform_indices = @transform_2, window_bounds = array<i64: 32, 32>}, {transform_indices = @transform_3, window_bounds = array<i64: 1, 32>}, {transform_indices = @transform_4, window_bounds = array<i64: 1, 32>}, {transform_indices = @transform_5, window_bounds = array<i64: 16, 32>}]} {
    %c0_i32 = arith.constant 0 : i32
    %0 = arith.cmpi eq, %arg2, %c0_i32 : i32
    %1 = arith.extui %0 : i1 to i32
    %c0_i32_0 = arith.constant 0 : i32
    %2 = arith.cmpi ne, %1, %c0_i32_0 : i32
    scf.if %2 {
      %cst_17 = arith.constant 0.000000e+00 : f32
      %17 = vector.broadcast %cst_17 : f32 to vector<16x32xf32>
      %c0_18 = arith.constant 0 : index
      %c0_19 = arith.constant 0 : index
      %18 = vector.load %arg9[%c0_18, %c0_19] : memref<16x32xf32, #tpu.memory_space<vmem>>, vector<16x32xf32>
      tpu.vector_store %arg9[%c0_18, %c0_19], %17 {strides = array<i32>} : memref<16x32xf32, #tpu.memory_space<vmem>>, vector<16x32xf32>,
      %cst_20 = arith.constant 0.000000e+00 : f32
      %19 = vector.broadcast %cst_20 : f32 to vector<16x32xf32>
      %c0_21 = arith.constant 0 : index
      %c0_22 = arith.constant 0 : index
      %20 = vector.load %arg10[%c0_21, %c0_22] : memref<16x32xf32, #tpu.memory_space<vmem>>, vector<16x32xf32>
      tpu.vector_store %arg10[%c0_21, %c0_22], %19 {strides = array<i32>} : memref<16x32xf32, #tpu.memory_space<vmem>>, vector<16x32xf32>,
    } else {
    }
    %c0 = arith.constant 0 : index
    %c0_1 = arith.constant 0 : index
    %3 = vector.load %arg3[%c0, %c0_1] : memref<16x32xf32, #tpu.memory_space<vmem>>, vector<16x32xf32>
    %c0_2 = arith.constant 0 : index
    %c0_3 = arith.constant 0 : index
    %4 = vector.load %arg9[%c0_2, %c0_3] : memref<16x32xf32, #tpu.memory_space<vmem>>, vector<16x32xf32>
    %c0_4 = arith.constant 0 : index
    %c0_5 = arith.constant 0 : index
    %5 = vector.load %arg4[%c0_4, %c0_5] : memref<32x32xf32, #tpu.memory_space<vmem>>, vector<32x32xf32>
    %cst = arith.constant dense<0.000000e+00> : vector<16x32xf32>
    %6 = tpu.matmul %3, %5, %cst {dimension_numbers = #tpu.dot_dimension_numbers<[1], [0], [0], [1], [0, 0, 1, 1], [], []>} : vector<16x32xf32>, vector<32x32xf32>, vector<16x32xf32> -> vector<16x32xf32>
    %7 = arith.addf %4, %6 : vector<16x32xf32>
    %c0_6 = arith.constant 0 : index
    %c0_7 = arith.constant 0 : index
    %8 = vector.load %arg9[%c0_6, %c0_7] : memref<16x32xf32, #tpu.memory_space<vmem>>, vector<16x32xf32>
    tpu.vector_store %arg9[%c0_6, %c0_7], %7 {strides = array<i32>} : memref<16x32xf32, #tpu.memory_space<vmem>>, vector<16x32xf32>,
    %c0_8 = arith.constant 0 : index
    %c0_9 = arith.constant 0 : index
    %9 = vector.load %arg10[%c0_8, %c0_9] : memref<16x32xf32, #tpu.memory_space<vmem>>, vector<16x32xf32>
    %c0_10 = arith.constant 0 : index
    %c0_11 = arith.constant 0 : index
    %10 = vector.load %arg5[%c0_10, %c0_11] : memref<32x32xf32, #tpu.memory_space<vmem>>, vector<32x32xf32>
    %cst_12 = arith.constant dense<0.000000e+00> : vector<16x32xf32>
    %11 = tpu.matmul %3, %10, %cst_12 {dimension_numbers = #tpu.dot_dimension_numbers<[1], [0], [0], [1], [0, 0, 1, 1], [], []>} : vector<16x32xf32>, vector<32x32xf32>, vector<16x32xf32> -> vector<16x32xf32>
    %12 = arith.addf %9, %11 : vector<16x32xf32>
    %c0_13 = arith.constant 0 : index
    %c0_14 = arith.constant 0 : index
    %13 = vector.load %arg10[%c0_13, %c0_14] : memref<16x32xf32, #tpu.memory_space<vmem>>, vector<16x32xf32>
    tpu.vector_store %arg10[%c0_13, %c0_14], %12 {strides = array<i32>} : memref<16x32xf32, #tpu.memory_space<vmem>>, vector<16x32xf32>,
    %c0_i32_15 = arith.constant 0 : i32
    %14 = arith.cmpi eq, %arg2, %c0_i32_15 : i32
    %15 = arith.extui %14 : i1 to i32
    %c0_i32_16 = arith.constant 0 : i32
    %16 = arith.cmpi ne, %15, %c0_i32_16 : i32
    scf.if %16 {
      %c0_17 = arith.constant 0 : index
      %c0_18 = arith.constant 0 : index
      %17 = vector.load %arg9[%c0_17, %c0_18] : memref<16x32xf32, #tpu.memory_space<vmem>>, vector<16x32xf32>
      %c0_19 = arith.constant 0 : index
      %c0_20 = arith.constant 0 : index
      %18 = vector.load %arg6[%c0_19, %c0_20] : memref<1x32xf32, #tpu.memory_space<vmem>>, vector<1x32xf32>
      %19 = vector.broadcast %18 : vector<1x32xf32> to vector<16x32xf32>
      %20 = arith.addf %17, %19 : vector<16x32xf32>
      %c0_21 = arith.constant 0 : index
      %c0_22 = arith.constant 0 : index
      %21 = vector.load %arg10[%c0_21, %c0_22] : memref<16x32xf32, #tpu.memory_space<vmem>>, vector<16x32xf32>
      %c0_23 = arith.constant 0 : index
      %c0_24 = arith.constant 0 : index
      %22 = vector.load %arg7[%c0_23, %c0_24] : memref<1x32xf32, #tpu.memory_space<vmem>>, vector<1x32xf32>
      %23 = vector.broadcast %22 : vector<1x32xf32> to vector<16x32xf32>
      %24 = arith.addf %21, %23 : vector<16x32xf32>
      %25 = arith.negf %24 : vector<16x32xf32>
      %26 = math.exp %25 : vector<16x32xf32>
      %cst_25 = arith.constant 1.000000e+00 : f32
      %27 = vector.broadcast %cst_25 : f32 to vector<16x32xf32>
      %28 = arith.addf %27, %26 : vector<16x32xf32>
      %29 = arith.divf %27, %28 : vector<16x32xf32>
      %30 = arith.mulf %20, %29 : vector<16x32xf32>
      %c0_26 = arith.constant 0 : index
      %c0_27 = arith.constant 0 : index
      %31 = vector.load %arg8[%c0_26, %c0_27] : memref<16x32xf32, #tpu.memory_space<vmem>>, vector<16x32xf32>
      tpu.vector_store %arg8[%c0_26, %c0_27], %30 {strides = array<i32>} : memref<16x32xf32, #tpu.memory_space<vmem>>, vector<16x32xf32>,
    } else {
    }
    return
  }
  func.func @transform_0(%arg0: i32, %arg1: i32, %arg2: i32) -> (i32, i32) {
    %c0_i32 = arith.constant 0 : i32
    return %arg0, %arg2 : i32, i32
  }
  func.func @transform_1(%arg0: i32, %arg1: i32, %arg2: i32) -> (i32, i32) {
    %c0_i32 = arith.constant 0 : i32
    return %arg2, %arg1 : i32, i32
  }
  func.func @transform_2(%arg0: i32, %arg1: i32, %arg2: i32) -> (i32, i32) {
    %c0_i32 = arith.constant 0 : i32
    return %arg2, %arg1 : i32, i32
  }
  func.func @transform_3(%arg0: i32, %arg1: i32, %arg2: i32) -> (i32, i32) {
    %c0_i32 = arith.constant 0 : i32
    %c0_i32_0 = arith.constant 0 : i32
    return %c0_i32, %arg1 : i32, i32
  }
  func.func @transform_4(%arg0: i32, %arg1: i32, %arg2: i32) -> (i32, i32) {
    %c0_i32 = arith.constant 0 : i32
    %c0_i32_0 = arith.constant 0 : i32
    return %c0_i32, %arg1 : i32, i32
  }
  func.func @transform_5(%arg0: i32, %arg1: i32, %arg2: i32) -> (i32, i32) {
    %c0_i32 = arith.constant 0 : i32
    return %arg0, %arg1 : i32, i32
  }
}

</mosaic_0001>

<bundles_post_ra>
// kernel: tpu_custom_call.1
= control target key start
LH: loop header
LB: loop body
LE: loop exit
PB: predicated region body
PF: predicated region fallthrough
CT: control target
= control target key end

     0   :  { %10 = vsyncpa [#allocation5], 0  ;;  %s600_s0 = inlined_call_operand.hbm [shape: f32[16,32], index: 0, kind: input, shape index: {}]   ;;  %s601_s1 = inlined_call_operand.hbm [shape: f32[32,32], index: 1, kind: input, shape index: {}]   ;;  %s602_s2 = inlined_call_operand.hbm [shape: f32[32,32], index: 2, kind: input, shape index: {}]   ;;  %s603_s3 = inlined_call_operand.vmem [shape: f32[1,32], index: 3, kind: input, shape index: {}]   ;;  %s604_s4 = inlined_call_operand.vmem [shape: f32[1,32], index: 4, kind: input, shape index: {}]   ;;  %s605_s5 = inlined_call_operand.hbm [shape: f32[16,32], index: 5, kind: output, shape index: {}]  }
   0x1   :  { %11 = vsyncpa [#allocation8], 0 }
   0x2   :  { %12 = vsyncpa [#allocation6], 0  ;;  %s476_s18 = smov [#allocation7]   ;;  %s477_s20 = smov [#allocation4]  }
   0x3   :  { %s30_s19 = sshll.u32 %s476_s18, 4  ;;  %s18_s21 = sshll.u32 %s477_s20, 4  ;;  %s31_s19 = int_to_ptr.vmem [resolvable:$true] %s30_s19  ;;  %s513_s21 = int_to_ptr.vmem [resolvable:$true] %s18_s21 }
   0x4   :  { %s382_s24 = scalar_lea.hbm %s601_s1, 512 }
   0x5   :  { %p383_p0 = scmp.ne.s32.totalorder %s601_s1, %s382_s24  ;;  %p386_p1 = scmp.lt.u32.totalorder %s382_s24, %s601_s1 }
   0x7   :  { %p388_p2 = pnand %p386_p1, %p383_p0 }
   0x9   :  { %391 = shalt.err (!%p388_p2)
}
   0xa   :  { %s392_s29 = scalar_lea.vmem %s31_s19, 512  ;;  %p397_p4 = scmp.lt.s32.totalorder %s31_s19, %s31_s19 }
   0xb   :  { %p393_p3 = scmp.ne.s32.totalorder %s31_s19, %s392_s29  ;;  %p398_p5 = scmp.lt.s32.totalorder %s392_s29, %s392_s29 }
   0xd   :  { %p399_p6 = por %p398_p5, %p397_p4 }
   0xf   :  { %p400_p7 = pnand %p399_p6, %p393_p3 }
  0x11   :  { %403 = shalt.err (!%p400_p7)
}
  0x12   :  { %s478_s30 = smov 128   ;;  %s479_s6 = smov 8  }
  0x13   :  { %36 = dma.hbm_to_vmem [thread:$0]  %s601_s1, 512, %s31_s19, [#allocation8], %s478_s30, %s478_s30, %s479_s6  }
  0x14   :  { %s404_s11 = scalar_lea.hbm %s600_s0, 256 }
  0x15   :  { %p405_p8 = scmp.ne.s32.totalorder %s600_s0, %s404_s11  ;;  %p408_p9 = scmp.lt.u32.totalorder %s404_s11, %s600_s0 }
  0x17   :  { %p410_p10 = pnand %p408_p9, %p405_p8 }
  0x19   :  { %413 = shalt.err (!%p410_p10)
}
  0x1a   :  { %s414_s16 = scalar_lea.vmem %s513_s21, 256  ;;  %p419_p12 = scmp.lt.s32.totalorder %s513_s21, %s513_s21 }
  0x1b   :  { %p415_p11 = scmp.ne.s32.totalorder %s513_s21, %s414_s16  ;;  %p420_p13 = scmp.lt.s32.totalorder %s414_s16, %s414_s16 }
  0x1d   :  { %p421_p0 = por %p420_p13, %p419_p12 }
  0x1f   :  { %p422_p1 = pnand %p421_p0, %p415_p11 }
  0x21   :  { %425 = shalt.err (!%p422_p1)
}
  0x22   :  { %24 = dma.hbm_to_vmem [thread:$0]  %s600_s0, 256, %s513_s21, [#allocation5], %s478_s30, %s478_s30, %s479_s6  }
  0x23   :  { %s480_s18 = smov [#allocation9]   ;;  %s426_s23 = scalar_lea.hbm %s602_s2, 512 }
  0x24   :  { %s42_s19 = sshll.u32 %s480_s18, 4  ;;  %p427_p2 = scmp.ne.s32.totalorder %s602_s2, %s426_s23  ;;  %s43_s19 = int_to_ptr.vmem [resolvable:$true] %s42_s19 }
  0x25   :  { %p430_p3 = scmp.lt.u32.totalorder %s426_s23, %s602_s2 }
  0x27   :  { %p432_p4 = pnand %p430_p3, %p427_p2 }
  0x29   :  { %435 = shalt.err (!%p432_p4)
}
  0x2a   :  { %s436_s28 = scalar_lea.vmem %s43_s19, 512  ;;  %p441_p6 = scmp.lt.s32.totalorder %s43_s19, %s43_s19 }
  0x2b   :  { %p437_p5 = scmp.ne.s32.totalorder %s43_s19, %s436_s28  ;;  %p442_p7 = scmp.lt.s32.totalorder %s436_s28, %s436_s28 }
  0x2d   :  { %p443_p8 = por %p442_p7, %p441_p6 }
  0x2f   :  { %p444_p9 = pnand %p443_p8, %p437_p5 }
  0x31   :  { %447 = shalt.err (!%p444_p9)
}
  0x32   :  { %48 = dma.hbm_to_vmem [thread:$0]  %s602_s2, 512, %s43_s19, [#allocation8], %s478_s30, %s478_s30, %s479_s6  }
  0x33   :  { %470 = dma.done.wait [#allocation5], 256  }
  0x34   :  { %471 = vsyncadd [#allocation5], 4294967040 }
  0x35   :  { %472 = dma.done.wait [#allocation8], 1024  }
  0x36   :  { %473 = vsyncadd [#allocation8], 4294966272  ;;  %vm66_vm0 = vcmask 261120   ;;  %v481_v0 = vmov 0.0   ;;  %v167_v1 = vld [vmem:[#allocation9] sm:$0xff]  ;;  %v168_v2 = vld [vmem:[#allocation9 + $0x8] sm:$0xff] }
  0x37   :  { %70 = vst.msk [vmem:[#allocation3 + $0x8] sm:$0xff] %vm66_vm0, %v481_v0  ;;  %67 = vst.msk [vmem:[#allocation2] sm:$0xff] %vm66_vm0, %v481_v0  ;;  %v169_v3 = vld [vmem:[#allocation9 + $0x10] sm:$0xff]  ;;  %v359_v4 = vpack.c.bf16 %v168_v2, %v167_v1  ;;  %v170_v5 = vld [vmem:[#allocation9 + $0x18] sm:$0xff] }
  0x38   :  { %68 = vst.msk [vmem:[#allocation2 + $0x8] sm:$0xff] %vm66_vm0, %v481_v0  ;;  %69 = vst.msk [vmem:[#allocation3] sm:$0xff] %vm66_vm0, %v481_v0  ;;  %v71_v6 = vld [vmem:[#allocation4] sm:$0xff]  ;;  %v363_v7 = vpack.c.bf16 %v170_v5, %v169_v3  ;;  %v75_v8 = vld [vmem:[#allocation7] sm:$0xff] }
  0x39   :  { %348 = vmatprep.mubr.msk.f32.mxu1 %vm66_vm0, %v71_v6  ;;  %v76_v9 = vld [vmem:[#allocation7 + $0x8] sm:$0xff]  ;;  %v77_v10 = vld [vmem:[#allocation7 + $0x10] sm:$0xff]  ;;  %337 = vmatprep.mubr.msk.f32.mxu0 %vm66_vm0, %v71_v6  ;;  %v78_v12 = vld [vmem:[#allocation7 + $0x18] sm:$0xff] }
  0x3a   :  { %360 = vmatprep.subr.bf16.mxu1 %v359_v4  ;;  %v351_v11 = vpack.c.bf16 %v76_v9, %v75_v8  ;;  %v355_v13 = vpack.c.bf16 %v78_v12, %v77_v10  ;;  %v72_v14 = vld [vmem:[#allocation4 + $0x8] sm:$0xff]  ;;  %v314_v27 = vld [vmem:[%s604_s4] ss:$0 sm:$0xff]  ;;  %s482_s4 = smov [#allocation10]  }
  0x3b   :  { %362 = vmatpush3.bf16.msra.mxu1 %v359_v4  ;;  %v313_v39 = vld [vmem:[%s603_s3] ss:$0 sm:$0xff]  ;;  %s296_s9 = sshll.u32 %s482_s4, 4  ;;  %s297_s9 = int_to_ptr.vmem [resolvable:$true] %s296_s9 }
  0x3c   :  { %364 = vmatprep.subr.bf16.mxu1 %v363_v7  ;;  %352 = vmatprep.subr.bf16.mxu0 %v351_v11  ;;  %s448_s10 = scalar_lea.vmem %s297_s9, 256  ;;  %p453_p11 = scmp.lt.s32.totalorder %s297_s9, %s297_s9 }
  0x3d   :  { %354 = vmatpush3.bf16.msra.mxu0 %v351_v11  ;;  %p449_p10 = scmp.ne.s32.totalorder %s297_s9, %s448_s10  ;;  %p454_p12 = scmp.lt.s32.totalorder %s448_s10, %s448_s10 }
  0x3e   :  { %356 = vmatprep.subr.bf16.mxu0 %v355_v13  ;;  %v166_v15 = vld [vmem:[#allocation3 + $0x8] sm:$0xff]  ;;  %v73_v21 = vld [vmem:[#allocation2] sm:$0xff] }
  0x3f   :  { %366 = vmatpush3.bf16.msra.mxu1 %v363_v7  ;;  %v165_v16 = vld [vmem:[#allocation3] sm:$0xff]  ;;  %v74_v18 = vld [vmem:[#allocation2 + $0x8] sm:$0xff]  ;;  %p455_p13 = por %p454_p12, %p453_p11 }
  0x41   :  { %358 = vmatpush3.bf16.msra.mxu0 %v355_v13  ;;  %p456_p0 = pnand %p455_p13, %p449_p10 }
  0x42   :  { %349 = vmatmul.mubr.msk.f32.vlgmr.msra.gmra.mrb[0].mxu1 %vm66_vm0, %v72_v14 }
  0x44   :  { %338 = vmatmul.mubr.msk.f32.vlgmr.msra.gmra.mrb[0].mxu0 %vm66_vm0, %v72_v14 }
 0x115   :  { %v350_v17 = vpop.f32.mrb[0].mxu1 }
 0x116   :  { %v247_v19 = vadd.f32 %v350_v17, %v166_v15  ;;  %v237_v20 = vpop.f32.mrb[1].mxu1 }
 0x117   :  { %v246_v22 = vadd.f32 %v237_v20, %v165_v16  ;;  %v339_v23 = vpop.f32.mrb[0].mxu0 }
 0x118   :  { %249 = vst.msk [vmem:[#allocation3 + $0x8] sm:$0xff] %vm66_vm0, %v247_v19  ;;  %v162_v24 = vadd.f32 %v339_v23, %v74_v18  ;;  %v152_v25 = vpop.f32.mrb[1].mxu0 }
 0x119   :  { %248 = vst.msk [vmem:[#allocation3] sm:$0xff] %vm66_vm0, %v246_v22  ;;  %v161_v26 = vadd.f32 %v152_v25, %v73_v21 }
 0x11a   :  { %164 = vst.msk [vmem:[#allocation2 + $0x8] sm:$0xff] %vm66_vm0, %v162_v24 }
 0x11b   :  { %163 = vst.msk [vmem:[#allocation2] sm:$0xff] %vm66_vm0, %v161_v26 }
 0x11f   :  { %v265_v28 = vld [vmem:[#allocation3 + $0x8] sm:$0xff] }
 0x120   :  { %v264_v29 = vld [vmem:[#allocation3] sm:$0xff]  ;;  %v274_v30 = vadd.f32 %v314_v27, %v265_v28 }
 0x121   :  { %v273_v31 = vadd.f32 %v314_v27, %v264_v29  ;;  %v254_v38 = vld [vmem:[#allocation2 + $0x8] sm:$0xff] }
 0x122   :  { %v316_v32 = vmul.f32 -1.442695, %v274_v30  ;;  %v253_v40 = vld [vmem:[#allocation2] sm:$0xff]  ;;  %v263_v41 = vadd.f32 %v313_v39, %v254_v38 }
 0x123   :  { %v315_v33 = vmul.f32 -1.442695, %v273_v31  ;;  %v262_v42 = vadd.f32 %v313_v39, %v253_v40 }
 0x124   :  { %374 = vpow2.f32 %v316_v32 }
 0x125   :  { %376 = vpow2.f32 %v315_v33 }
 0x12e   :  { %v375_v34 = vpop.eup %374 }
 0x12f   :  { %v377_v35 = vpop.eup %376  ;;  %v282_v36 = vadd.f32 1.0, %v375_v34 }
 0x130   :  { %v281_v37 = vadd.f32 1.0, %v377_v35 }
 0x131   :  { %378 = vrcp.f32 %v282_v36 }
 0x132   :  { %380 = vrcp.f32 %v281_v37 }
 0x13b   :  { %v379_v43 = vpop.eup %378 }
 0x13c   :  { %v381_v44 = vpop.eup %380  ;;  %v288_v45 = vmul.f32 %v379_v43, %v263_v41 }
 0x13d   :  { %v287_v46 = vmul.f32 %v381_v44, %v262_v42 }
 0x13e   :  { %290 = vst.msk [vmem:[#allocation10 + $0x8] sm:$0xff] %vm66_vm0, %v288_v45 }
 0x13f   :  { %289 = vst.msk [vmem:[#allocation10] sm:$0xff] %vm66_vm0, %v287_v46 }
 0x140   :  { %459 = shalt.err (!%p456_p0)
}
 0x141   :  { %s460_s12 = scalar_lea.hbm %s605_s5, 256 }
 0x142   :  { %p461_p1 = scmp.ne.s32.totalorder %s605_s5, %s460_s12  ;;  %p464_p2 = scmp.lt.u32.totalorder %s460_s12, %s605_s5 }
 0x144   :  { %p466_p3 = pnand %p464_p2, %p461_p1 }
 0x146   :  { %469 = shalt.err (!%p466_p3)
}
 0x147   :  { %302 = dma.vmem_to_hbm [thread:$0]  %s297_s9, 256, %s605_s5, [#allocation6], %s478_s30, %s478_s30, %s479_s6  }
 0x148   :  { %474 = dma.done.wait [#allocation6], 256  }
 0x149   :  { %475 = vsyncadd [#allocation6], 4294967040 }
 0x14a   :  { %306 = vsyncpa [#allocation5], 1 }
 0x14b   :  { %307 = vsyncpa [#allocation8], 1 }
 0x14c   :  { %308 = vsyncpa [#allocation6], 1 }

</bundles_post_ra>
